<compile_context>
chip_gen: v7x
topology: tpu7x:2x2x1
jax: 0.10.0
libtpu: 0.0.40
codegen_flags: <defaults>
</compile_context>

<pallas_src>
import functools

import jax
import jax.numpy as jnp
from jax.experimental import pallas as pl
from jax.experimental.pallas import tpu as pltpu


def bert_output_kernel(h_ref, w_ref, b_ref, res_ref, g_ref, beta_ref,
                       o_ref, acc_ref, *, eps):
    k = pl.program_id(1)

    @pl.when(k == 0)
    def _():
        acc_ref[...] = jnp.zeros_like(acc_ref)

    # Partial matmul over the streamed K (intermediate) tile.  f32 accumulate.
    acc_ref[...] += jnp.dot(h_ref[...], w_ref[...],
                            preferred_element_type=jnp.float32)

    @pl.when(k == pl.num_programs(1) - 1)
    def _():
        # dense bias + residual add, then LayerNorm, all in f32.
        y = (acc_ref[...]
             + b_ref[...].astype(jnp.float32)
             + res_ref[...].astype(jnp.float32))
        mu = jnp.mean(y, axis=-1, keepdims=True)
        var = jnp.mean((y - mu) ** 2, axis=-1, keepdims=True)
        y = (y - mu) * jax.lax.rsqrt(var + eps)
        y = y * g_ref[...].astype(jnp.float32) + beta_ref[...].astype(jnp.float32)
        o_ref[...] = y.astype(o_ref.dtype)


def bert_output(hidden_states, input_tensor, weight, bias, gamma, beta,
                *, eps=1e-12):
    """hidden_states: [B, S, I], input_tensor: [B, S, E],
    weight: [I, E] (pre-transposed vs nn.Linear), bias/gamma/beta: [1, E]."""
    B, S, I = hidden_states.shape
    E = input_tensor.shape[-1]
    M = B * S

    h2d = hidden_states.reshape(M, I)
    r2d = input_tensor.reshape(M, E)

    # Row tile: >=128 when divisible (MXU-friendly), else the full extent.
    if M % 256 == 0:
        TM = 256
    elif M % 128 == 0:
        TM = 128
    else:
        TM = M
    # K tile for streaming the weight along the intermediate dimension.
    if I % 512 == 0:
        TK = 512
    elif I % 256 == 0:
        TK = 256
    elif I % 128 == 0:
        TK = 128
    else:
        TK = I

    grid = (M // TM, I // TK)

    kernel = functools.partial(bert_output_kernel, eps=eps)

    out2d = pl.pallas_call(
        kernel,
        out_shape=jax.ShapeDtypeStruct((M, E), hidden_states.dtype),
        grid=grid,
        in_specs=[
            pl.BlockSpec((TM, TK), lambda i, k: (i, k)),   # hidden rows
            pl.BlockSpec((TK, E), lambda i, k: (k, 0)),    # streamed weight tile
            pl.BlockSpec((1, E), lambda i, k: (0, 0)),     # bias
            pl.BlockSpec((TM, E), lambda i, k: (i, 0)),    # residual rows
            pl.BlockSpec((1, E), lambda i, k: (0, 0)),     # LN gamma
            pl.BlockSpec((1, E), lambda i, k: (0, 0)),     # LN beta
        ],
        out_specs=pl.BlockSpec((TM, E), lambda i, k: (i, 0)),
        scratch_shapes=[pltpu.VMEM((TM, E), jnp.float32)],
        compiler_params=pltpu.CompilerParams(
            dimension_semantics=("parallel", "arbitrary")),
    )(h2d, weight, bias, r2d, gamma, beta)

    return out2d.reshape(B, S, E)


def bert_output_ref(hidden_states, input_tensor, weight, bias, gamma, beta,
                    *, eps=1e-12):
    """Pure-JAX reference with the same semantics as the PyTorch module."""
    y = hidden_states @ weight + bias          # dense
    y = y + input_tensor                        # (dropout = identity) + residual
    mu = jnp.mean(y, axis=-1, keepdims=True)
    var = jnp.mean((y - mu) ** 2, axis=-1, keepdims=True)
    return (y - mu) / jnp.sqrt(var + eps) * gamma + beta


if __name__ == "__main__":
    # Small config consistent with the module.
    B, S = 2, 8
    emb_dim = 32
    intermediate = 64
    eps = 1e-12

    key = jax.random.PRNGKey(0)
    k_h, k_r, k_w, k_b, k_g, k_bt = jax.random.split(key, 6)

    hidden_states = jax.random.normal(k_h, (B, S, intermediate), jnp.float32)
    input_tensor = jax.random.normal(k_r, (B, S, emb_dim), jnp.float32)

    # Parameters (weight stored as [in, out], i.e. transposed vs nn.Linear).
    weight = jax.random.normal(k_w, (intermediate, emb_dim), jnp.float32) * 0.02
    bias = jax.random.normal(k_b, (1, emb_dim), jnp.float32) * 0.02
    gamma = jnp.ones((1, emb_dim), jnp.float32) + 0.01 * jax.random.normal(k_g, (1, emb_dim), jnp.float32)
    beta = 0.01 * jax.random.normal(k_bt, (1, emb_dim), jnp.float32)

    out = bert_output(hidden_states, input_tensor, weight, bias, gamma, beta, eps=eps)
    out = jax.block_until_ready(out)

    ref = bert_output_ref(hidden_states, input_tensor, weight, bias, gamma, beta, eps=eps)
    assert out.shape == (B, S, emb_dim)
    assert jnp.allclose(out, ref, atol=1e-4, rtol=1e-4), "mismatch vs reference"

    print("KERNEL_OK")
</pallas_src>

<mosaic_0001>
module attributes {stable_mosaic.version = 11 : i64} {
  func.func @bert_output_kernel(%arg0: i32, %arg1: i32, %arg2: memref<16x64xf32, #tpu.memory_space<vmem>>, %arg3: memref<64x32xf32, #tpu.memory_space<vmem>>, %arg4: memref<1x32xf32, #tpu.memory_space<vmem>>, %arg5: memref<16x32xf32, #tpu.memory_space<vmem>>, %arg6: memref<1x32xf32, #tpu.memory_space<vmem>>, %arg7: memref<1x32xf32, #tpu.memory_space<vmem>>, %arg8: memref<16x32xf32, #tpu.memory_space<vmem>>, %arg9: memref<16x32xf32, #tpu.memory_space<vmem>>) attributes {dimension_semantics = [#tpu.dimension_semantics<parallel>, #tpu.dimension_semantics<arbitrary>], iteration_bounds = array<i64: 1, 1>, scalar_prefetch = 0 : i64, scratch_operands = 1 : i64, tpu.core_type = #tpu.core_type<tc>, window_params = [{transform_indices = @transform_0, window_bounds = array<i64: 16, 64>}, {transform_indices = @transform_1, window_bounds = array<i64: 64, 32>}, {pipeline_mode = #tpu.pipeline_mode<synchronous>, transform_indices = @transform_2, window_bounds = array<i64: 1, 32>}, {transform_indices = @transform_3, window_bounds = array<i64: 16, 32>}, {pipeline_mode = #tpu.pipeline_mode<synchronous>, transform_indices = @transform_4, window_bounds = array<i64: 1, 32>}, {pipeline_mode = #tpu.pipeline_mode<synchronous>, transform_indices = @transform_5, window_bounds = array<i64: 1, 32>}, {transform_indices = @transform_6, window_bounds = array<i64: 16, 32>}]} {
    %c0_i32 = arith.constant 0 : i32
    %0 = arith.cmpi eq, %arg1, %c0_i32 : i32
    %1 = arith.extui %0 : i1 to i32
    %c0_i32_0 = arith.constant 0 : i32
    %2 = arith.cmpi ne, %1, %c0_i32_0 : i32
    scf.if %2 {
      %cst_10 = arith.constant 0.000000e+00 : f32
      %12 = vector.broadcast %cst_10 : f32 to vector<16x32xf32>
      %c0_11 = arith.constant 0 : index
      %c0_12 = arith.constant 0 : index
      %13 = vector.load %arg9[%c0_11, %c0_12] : memref<16x32xf32, #tpu.memory_space<vmem>>, vector<16x32xf32>
      tpu.vector_store %arg9[%c0_11, %c0_12], %12 {strides = array<i32>} : memref<16x32xf32, #tpu.memory_space<vmem>>, vector<16x32xf32>,
    } else {
    }
    %c0 = arith.constant 0 : index
    %c0_1 = arith.constant 0 : index
    %3 = vector.load %arg9[%c0, %c0_1] : memref<16x32xf32, #tpu.memory_space<vmem>>, vector<16x32xf32>
    %c0_2 = arith.constant 0 : index
    %c0_3 = arith.constant 0 : index
    %4 = vector.load %arg2[%c0_2, %c0_3] : memref<16x64xf32, #tpu.memory_space<vmem>>, vector<16x64xf32>
    %c0_4 = arith.constant 0 : index
    %c0_5 = arith.constant 0 : index
    %5 = vector.load %arg3[%c0_4, %c0_5] : memref<64x32xf32, #tpu.memory_space<vmem>>, vector<64x32xf32>
    %cst = arith.constant dense<0.000000e+00> : vector<16x32xf32>
    %6 = tpu.matmul %4, %5, %cst {dimension_numbers = #tpu.dot_dimension_numbers<[1], [0], [0], [1], [0, 0, 1, 1], [], []>} : vector<16x64xf32>, vector<64x32xf32>, vector<16x32xf32> -> vector<16x32xf32>
    %7 = arith.addf %3, %6 : vector<16x32xf32>
    %c0_6 = arith.constant 0 : index
    %c0_7 = arith.constant 0 : index
    %8 = vector.load %arg9[%c0_6, %c0_7] : memref<16x32xf32, #tpu.memory_space<vmem>>, vector<16x32xf32>
    tpu.vector_store %arg9[%c0_6, %c0_7], %7 {strides = array<i32>} : memref<16x32xf32, #tpu.memory_space<vmem>>, vector<16x32xf32>,
    %c0_i32_8 = arith.constant 0 : i32
    %9 = arith.cmpi eq, %arg1, %c0_i32_8 : i32
    %10 = arith.extui %9 : i1 to i32
    %c0_i32_9 = arith.constant 0 : i32
    %11 = arith.cmpi ne, %10, %c0_i32_9 : i32
    scf.if %11 {
      %c0_10 = arith.constant 0 : index
      %c0_11 = arith.constant 0 : index
      %12 = vector.load %arg9[%c0_10, %c0_11] : memref<16x32xf32, #tpu.memory_space<vmem>>, vector<16x32xf32>
      %c0_12 = arith.constant 0 : index
      %c0_13 = arith.constant 0 : index
      %13 = vector.load %arg4[%c0_12, %c0_13] : memref<1x32xf32, #tpu.memory_space<vmem>>, vector<1x32xf32>
      %14 = vector.broadcast %13 : vector<1x32xf32> to vector<16x32xf32>
      %15 = arith.addf %12, %14 : vector<16x32xf32>
      %c0_14 = arith.constant 0 : index
      %c0_15 = arith.constant 0 : index
      %16 = vector.load %arg5[%c0_14, %c0_15] : memref<16x32xf32, #tpu.memory_space<vmem>>, vector<16x32xf32>
      %17 = arith.addf %15, %16 : vector<16x32xf32>
      %cst_16 = arith.constant dense<0.000000e+00> : vector<16xf32>
      %18 = vector.multi_reduction <add>, %17, %cst_16 [1] : vector<16x32xf32> to vector<16xf32>
      %19 = vector.shape_cast %18 : vector<16xf32> to vector<16x1xf32>
      %cst_17 = arith.constant 3.200000e+01 : f32
      %20 = vector.broadcast %cst_17 : f32 to vector<16x1xf32>
      %21 = arith.divf %19, %20 : vector<16x1xf32>
      %22 = vector.broadcast %21 : vector<16x1xf32> to vector<16x32xf32>
      %23 = arith.subf %17, %22 : vector<16x32xf32>
      %24 = arith.mulf %23, %23 : vector<16x32xf32>
      %cst_18 = arith.constant dense<0.000000e+00> : vector<16xf32>
      %25 = vector.multi_reduction <add>, %24, %cst_18 [1] : vector<16x32xf32> to vector<16xf32>
      %26 = vector.shape_cast %25 : vector<16xf32> to vector<16x1xf32>
      %cst_19 = arith.constant 3.200000e+01 : f32
      %27 = vector.broadcast %cst_19 : f32 to vector<16x1xf32>
      %28 = arith.divf %26, %27 : vector<16x1xf32>
      %29 = vector.broadcast %21 : vector<16x1xf32> to vector<16x32xf32>
      %30 = arith.subf %17, %29 : vector<16x32xf32>
      %cst_20 = arith.constant 9.99999996E-13 : f32
      %31 = vector.broadcast %cst_20 : f32 to vector<16x1xf32>
      %32 = arith.addf %28, %31 : vector<16x1xf32>
      %33 = math.rsqrt %32 : vector<16x1xf32>
      %34 = vector.broadcast %33 : vector<16x1xf32> to vector<16x32xf32>
      %35 = arith.mulf %30, %34 : vector<16x32xf32>
      %c0_21 = arith.constant 0 : index
      %c0_22 = arith.constant 0 : index
      %36 = vector.load %arg6[%c0_21, %c0_22] : memref<1x32xf32, #tpu.memory_space<vmem>>, vector<1x32xf32>
      %37 = vector.broadcast %36 : vector<1x32xf32> to vector<16x32xf32>
      %38 = arith.mulf %35, %37 : vector<16x32xf32>
      %c0_23 = arith.constant 0 : index
      %c0_24 = arith.constant 0 : index
      %39 = vector.load %arg7[%c0_23, %c0_24] : memref<1x32xf32, #tpu.memory_space<vmem>>, vector<1x32xf32>
      %40 = vector.broadcast %39 : vector<1x32xf32> to vector<16x32xf32>
      %41 = arith.addf %38, %40 : vector<16x32xf32>
      %c0_25 = arith.constant 0 : index
      %c0_26 = arith.constant 0 : index
      %42 = vector.load %arg8[%c0_25, %c0_26] : memref<16x32xf32, #tpu.memory_space<vmem>>, vector<16x32xf32>
      tpu.vector_store %arg8[%c0_25, %c0_26], %41 {strides = array<i32>} : memref<16x32xf32, #tpu.memory_space<vmem>>, vector<16x32xf32>,
    } else {
    }
    return
  }
  func.func @transform_0(%arg0: i32, %arg1: i32) -> (i32, i32) {
    %c0_i32 = arith.constant 0 : i32
    return %arg0, %arg1 : i32, i32
  }
  func.func @transform_1(%arg0: i32, %arg1: i32) -> (i32, i32) {
    %c0_i32 = arith.constant 0 : i32
    %c0_i32_0 = arith.constant 0 : i32
    return %arg1, %c0_i32 : i32, i32
  }
  func.func @transform_2(%arg0: i32, %arg1: i32) -> (i32, i32) {
    %c0_i32 = arith.constant 0 : i32
    %c0_i32_0 = arith.constant 0 : i32
    %c0_i32_1 = arith.constant 0 : i32
    return %c0_i32, %c0_i32_0 : i32, i32
  }
  func.func @transform_3(%arg0: i32, %arg1: i32) -> (i32, i32) {
    %c0_i32 = arith.constant 0 : i32
    %c0_i32_0 = arith.constant 0 : i32
    return %arg0, %c0_i32 : i32, i32
  }
  func.func @transform_4(%arg0: i32, %arg1: i32) -> (i32, i32) {
    %c0_i32 = arith.constant 0 : i32
    %c0_i32_0 = arith.constant 0 : i32
    %c0_i32_1 = arith.constant 0 : i32
    return %c0_i32, %c0_i32_0 : i32, i32
  }
  func.func @transform_5(%arg0: i32, %arg1: i32) -> (i32, i32) {
    %c0_i32 = arith.constant 0 : i32
    %c0_i32_0 = arith.constant 0 : i32
    %c0_i32_1 = arith.constant 0 : i32
    return %c0_i32, %c0_i32_0 : i32, i32
  }
  func.func @transform_6(%arg0: i32, %arg1: i32) -> (i32, i32) {
    %c0_i32 = arith.constant 0 : i32
    %c0_i32_0 = arith.constant 0 : i32
    return %arg0, %c0_i32 : i32, i32
  }
}

</mosaic_0001>

<bundles_post_ra>
// kernel: tpu_custom_call.1
= control target key start
LH: loop header
LB: loop body
LE: loop exit
PB: predicated region body
PF: predicated region fallthrough
CT: control target
= control target key end

     0   :  { %vm43_vm0 = vcmask 523264   ;;  %vm28_vm1 = vcmask 261120   ;;  %v293_v5 = vmov 0.0   ;;  %s401_s0 = inlined_call_operand.vmem [shape: f32[16,64], index: 0, kind: input, shape index: {}]   ;;  %s402_s1 = inlined_call_operand.vmem [shape: f32[64,32], index: 1, kind: input, shape index: {}]   ;;  %s403_s2 = inlined_call_operand.vmem [shape: f32[1,32], index: 2, kind: input, shape index: {}]   ;;  %s404_s3 = inlined_call_operand.vmem [shape: f32[16,32], index: 3, kind: input, shape index: {}]   ;;  %s405_s4 = inlined_call_operand.vmem [shape: f32[1,32], index: 4, kind: input, shape index: {}]   ;;  %s406_s5 = inlined_call_operand.vmem [shape: f32[1,32], index: 5, kind: input, shape index: {}]   ;;  %s407_s6 = inlined_call_operand.hbm [shape: f32[16,32], index: 6, kind: output, shape index: {}]  }
   0x1   :  { %v35_v0 = vld [vmem:[%s402_s1] sm:$0xff]  ;;  %v36_v1 = vld [vmem:[%s402_s1 + $0x8] sm:$0xff]  ;;  %v37_v2 = vld [vmem:[%s402_s1 + $0x10] sm:$0xff]  ;;  %30 = vst.msk [vmem:[#allocation2 + $0x8] sm:$0xff] %vm28_vm1, %v293_v5 }
   0x2   :  { %v245_v3 = vpack.c.bf16 %v36_v1, %v35_v0  ;;  %v38_v4 = vld [vmem:[%s402_s1 + $0x18] sm:$0xff]  ;;  %29 = vst.msk [vmem:[#allocation2] sm:$0xff] %vm28_vm1, %v293_v5  ;;  %v39_v7 = vld [vmem:[%s402_s1 + $0x20] sm:$0xff]  ;;  %v40_v8 = vld [vmem:[%s402_s1 + $0x28] sm:$0xff] }
   0x3   :  { %v249_v6 = vpack.c.bf16 %v38_v4, %v37_v2  ;;  %v33_v9 = vld [vmem:[%s401_s0] sm:$0xff] }
   0x4   :  { %246 = vmatprep.subr.bf16.mxu0 %v245_v3  ;;  %242 = vmatprep.mubr.msk.f32.mxu0 %vm43_vm0, %v33_v9 }
   0x5   :  { %11 = vsyncpa [#allocation4], 0  ;;  %248 = vmatpush3.bf16.msra.mxu0 %v245_v3  ;;  %v253_v10 = vpack.c.bf16 %v40_v8, %v39_v7  ;;  %v41_v11 = vld [vmem:[%s402_s1 + $0x30] sm:$0xff]  ;;  %v42_v12 = vld [vmem:[%s402_s1 + $0x38] sm:$0xff]  ;;  %s294_s23 = smov [#allocation3]  }
   0x6   :  { %250 = vmatprep.subr.bf16.mxu0 %v249_v6  ;;  %v257_v13 = vpack.c.bf16 %v42_v12, %v41_v11  ;;  %v34_v14 = vld [vmem:[%s401_s0 + $0x8] sm:$0xff]  ;;  %v213_v21 = vld [vmem:[%s403_s2] ss:$0 sm:$0xff]  ;;  %s200_s24 = sshll.u32 %s294_s23, 4  ;;  %s201_s24 = int_to_ptr.vmem [resolvable:$true] %s200_s24 }
   0x7   :  { %v144_v24 = vld [vmem:[%s404_s3] sm:$0xff]  ;;  %v145_v27 = vld [vmem:[%s404_s3 + $0x8] sm:$0xff]  ;;  %s269_s25 = scalar_lea.vmem %s201_s24, 256  ;;  %p274_p1 = scmp.lt.s32.totalorder %s201_s24, %s201_s24 }
   0x8   :  { %v32_v15 = vld [vmem:[#allocation2 + $0x8] sm:$0xff]  ;;  %v214_v49 = vld [vmem:[%s405_s4] ss:$0 sm:$0xff]  ;;  %p270_p0 = scmp.ne.s32.totalorder %s201_s24, %s269_s25  ;;  %p275_p2 = scmp.lt.s32.totalorder %s269_s25, %s269_s25 }
   0x9   :  { %252 = vmatpush3.bf16.msra.mxu0 %v249_v6  ;;  %v31_v16 = vld [vmem:[#allocation2] sm:$0xff] }
   0xa   :  { %254 = vmatprep.subr.bf16.mxu0 %v253_v10  ;;  %v215_v51 = vld [vmem:[%s406_s5] ss:$0 sm:$0xff]  ;;  %p276_p3 = por %p275_p2, %p274_p1 }
   0xc   :  { %p277_p4 = pnand %p276_p3, %p270_p0 }
   0xd   :  { %256 = vmatpush3.bf16.msra.mxu0 %v253_v10 }
   0xe   :  { %258 = vmatprep.subr.bf16.mxu0 %v257_v13 }
  0x11   :  { %260 = vmatpush3.bf16.msra.mxu0 %v257_v13 }
  0x14   :  { %243 = vmatmul.mubr.msk.f32.vlgmr.msra.gmra.mrb[0].mxu0 %vm43_vm0, %v34_v14 }
  0xe7   :  { %v244_v17 = vpop.f32.mrb[0].mxu0 }
  0xe8   :  { %v126_v18 = vadd.f32 %v244_v17, %v32_v15  ;;  %v116_v19 = vpop.f32.mrb[1].mxu0 }
  0xe9   :  { %v125_v20 = vadd.f32 %v116_v19, %v31_v16 }
  0xea   :  { %129 = vst.msk [vmem:[#allocation2 + $0x8] sm:$0xff] %vm28_vm1, %v126_v18 }
  0xeb   :  { %128 = vst.msk [vmem:[#allocation2] sm:$0xff] %vm28_vm1, %v125_v20 }
  0xf1   :  { %v134_v22 = vld [vmem:[#allocation2 + $0x8] sm:$0xff] }
  0xf2   :  { %v133_v23 = vld [vmem:[#allocation2] sm:$0xff]  ;;  %v143_v26 = vadd.f32 %v213_v21, %v134_v22 }
  0xf3   :  { %v142_v25 = vadd.f32 %v213_v21, %v133_v23 }
  0xf4   :  { %v147_v30 = vadd.f32 %v145_v27, %v143_v26 }
  0xf5   :  { %v146_v28 = vadd.f32 %v144_v24, %v142_v25 }
  0xf6   :  { %v151_v31 = vsel %vm28_vm1, %v147_v30, 0.0 }
  0xf7   :  { %v148_v29 = vsel %vm28_vm1, %v146_v28, 0.0 }
  0xf8   :  { %149 = vadd.xlane.f32.xlu0 %v148_v29 }
  0xfc   :  { %152 = vadd.xlane.f32.xlu0 %v151_v31 }
 0x185   :  { %v150_v32 = vpop.xlane.xlu0 %149 }
 0x186   :  { %v155_v33 = vmul.f32 0.03125, %v150_v32 }
 0x188   :  { %v157_v34 = vsub.f32 %v146_v28, %v155_v33 }
 0x189   :  { %v153_v35 = vpop.xlane.xlu0 %152 }
 0x18a   :  { %v156_v36 = vmul.f32 0.03125, %v153_v35  ;;  %v159_v37 = vmul.f32 %v157_v34, %v157_v34 }
 0x18c   :  { %v158_v38 = vsub.f32 %v147_v30, %v156_v36  ;;  %v161_v39 = vsel %vm28_vm1, %v159_v37, 0.0 }
 0x18d   :  { %162 = vadd.xlane.f32.xlu1 %v161_v39 }
 0x18e   :  { %v160_v40 = vmul.f32 %v158_v38, %v158_v38 }
 0x190   :  { %v164_v41 = vsel %vm28_vm1, %v160_v40, 0.0 }
 0x191   :  { %165 = vadd.xlane.f32.xlu1 %v164_v41 }
 0x21a   :  { %v163_v42 = vpop.xlane.xlu1 %162 }
 0x21b   :  { %v167_v43 = vmul.f32 0.03125, %v163_v42 }
 0x21d   :  { %v169_v44 = vadd.f32 1e-12, %v167_v43 }
 0x21e   :  { %v166_v45 = vpop.xlane.xlu1 %165 }
 0x21f   :  { %265 = vrsqrt.f32 %v169_v44  ;;  %v168_v46 = vmul.f32 0.03125, %v166_v45 }
 0x221   :  { %v170_v47 = vadd.f32 1e-12, %v168_v46 }
 0x223   :  { %267 = vrsqrt.f32 %v170_v47 }
 0x229   :  { %v266_v48 = vpop.eup %265 }
 0x22a   :  { %v173_v50 = vmul.f32 %v266_v48, %v157_v34 }
 0x22c   :  { %v182_v52 = vmul.f32 %v214_v49, %v173_v50 }
 0x22d   :  { %v268_v53 = vpop.eup %267 }
 0x22e   :  { %v174_v54 = vmul.f32 %v268_v53, %v158_v38  ;;  %v191_v55 = vadd.f32 %v215_v51, %v182_v52 }
 0x230   :  { %v183_v56 = vmul.f32 %v214_v49, %v174_v54  ;;  %193 = vst.msk [vmem:[#allocation3] sm:$0xff] %vm28_vm1, %v191_v55 }
 0x232   :  { %v192_v57 = vadd.f32 %v215_v51, %v183_v56 }
 0x234   :  { %194 = vst.msk [vmem:[#allocation3 + $0x8] sm:$0xff] %vm28_vm1, %v192_v57 }
 0x235   :  { %280 = shalt.err (!%p277_p4)
}
 0x236   :  { %s281_s26 = scalar_lea.hbm %s407_s6, 256 }
 0x237   :  { %p282_p5 = scmp.ne.s32.totalorder %s407_s6, %s281_s26  ;;  %p285_p6 = scmp.lt.u32.totalorder %s281_s26, %s407_s6 }
 0x239   :  { %p287_p7 = pnand %p285_p6, %p282_p5 }
 0x23b   :  { %290 = shalt.err (!%p287_p7)
}
 0x23c   :  { %s295_s7 = smov 128   ;;  %s296_s8 = smov 8  }
 0x23d   :  { %206 = dma.vmem_to_hbm [thread:$0]  %s201_s24, 256, %s407_s6, [#allocation4], %s295_s7, %s295_s7, %s296_s8  }
 0x23e   :  { %291 = dma.done.wait [#allocation4], 256  }
 0x23f   :  { %292 = vsyncadd [#allocation4], 4294967040 }
 0x240   :  { %210 = vsyncpa [#allocation4], 1 }

</bundles_post_ra>
